<compile_context>
chip_gen: v7x
topology: tpu7x:2x2x1
jax: 0.10.0
libtpu: 0.0.40
codegen_flags: <defaults>
</compile_context>

<pallas_src>
import math

import jax
import jax.numpy as jnp
from jax.experimental import pallas as pl
from jax.experimental.pallas import tpu as pltpu


def _round_up(x, m):
    return (x + m - 1) // m * m


def _elu_f32(y):
    # ELU(alpha=1): y if y > 0 else exp(y) - 1  (computed safely in f32)
    return jnp.where(y > 0, y, jnp.exp(jnp.minimum(y, 0.0)) - 1.0)


# ----------------------------------------------------------------------------
# Pallas kernels: GEMM with fused bias + ELU epilogue
# ----------------------------------------------------------------------------
def _mm_bias_elu_kernel(x_ref, w_ref, b_ref, o_ref):
    # Single K step: no accumulator scratch, no pl.when phases.
    y = jnp.dot(x_ref[...], w_ref[...], preferred_element_type=jnp.float32)
    y = y + b_ref[...]
    o_ref[...] = _elu_f32(y).astype(o_ref.dtype)


def _mm_bias_elu_kloop_kernel(x_ref, w_ref, b_ref, o_ref, acc_ref):
    # General path for large K (k-loop over grid axis 2 with f32 accumulator).
    @pl.when(pl.program_id(2) == 0)
    def _():
        acc_ref[...] = jnp.zeros_like(acc_ref)

    acc_ref[...] += jnp.dot(x_ref[...], w_ref[...],
                            preferred_element_type=jnp.float32)

    @pl.when(pl.program_id(2) == pl.num_programs(2) - 1)
    def _():
        y = acc_ref[...] + b_ref[...]
        o_ref[...] = _elu_f32(y).astype(o_ref.dtype)


def matmul_bias_elu(patches, w_mat, bias, out_dtype=jnp.float32):
    """[M,K] @ [K,N] + bias[N] followed by ELU. bf16 MXU operands, f32 accum."""
    M, K = patches.shape
    _, N = w_mat.shape

    # --- adaptive tile selection --------------------------------------------
    if M >= 512:
        TM = 256                      # fills v6e/v7x 2x256^2 MXU, >=2 M tiles
    elif M >= 128:
        TM = 128
    else:
        TM = _round_up(M, 8)          # tiny M: don't pad rows up to 128
    Mp = _round_up(M, TM)

    Kp = _round_up(K, 128)
    if Kp > 512:
        Kp = _round_up(K, 512)
        TK = 512                      # big K steps: fewer grid iterations
    else:
        TK = Kp                       # single K step (no k-loop / scratch)

    Np = _round_up(N, 128)            # lane-dense output (unmasked stores)
    TN = 256 if (Np >= 256 and Np % 256 == 0) else 128

    # --- operand prep: bf16 GEMM inputs, f32 bias ---------------------------
    xp = jnp.pad(patches, ((0, Mp - M), (0, Kp - K))).astype(jnp.bfloat16)
    wp = jnp.pad(w_mat, ((0, Kp - K), (0, Np - N))).astype(jnp.bfloat16)
    bp = jnp.pad(bias, (0, Np - N)).astype(jnp.float32).reshape(1, Np)

    nk = Kp // TK
    if nk == 1:
        out = pl.pallas_call(
            _mm_bias_elu_kernel,
            out_shape=jax.ShapeDtypeStruct((Mp, Np), out_dtype),
            grid_spec=pltpu.PrefetchScalarGridSpec(
                num_scalar_prefetch=0,
                grid=(Mp // TM, Np // TN),
                in_specs=[
                    pl.BlockSpec((TM, TK), lambda i, j: (i, 0)),
                    pl.BlockSpec((TK, TN), lambda i, j: (0, j)),
                    pl.BlockSpec((1, TN), lambda i, j: (0, j)),
                ],
                out_specs=pl.BlockSpec((TM, TN), lambda i, j: (i, j))),
            compiler_params=pltpu.CompilerParams(
                dimension_semantics=("parallel", "parallel")),
        )(xp, wp, bp)
    else:
        out = pl.pallas_call(
            _mm_bias_elu_kloop_kernel,
            out_shape=jax.ShapeDtypeStruct((Mp, Np), out_dtype),
            grid_spec=pltpu.PrefetchScalarGridSpec(
                num_scalar_prefetch=0,
                grid=(Mp // TM, Np // TN, nk),
                in_specs=[
                    pl.BlockSpec((TM, TK), lambda i, j, k: (i, k)),
                    pl.BlockSpec((TK, TN), lambda i, j, k: (k, j)),
                    pl.BlockSpec((1, TN), lambda i, j, k: (0, j)),
                ],
                out_specs=pl.BlockSpec((TM, TN), lambda i, j, k: (i, j)),
                scratch_shapes=[pltpu.VMEM((TM, TN), jnp.float32)]),
            compiler_params=pltpu.CompilerParams(
                dimension_semantics=("parallel", "parallel", "arbitrary")),
        )(xp, wp, bp)
    return out[:M, :N]


# ----------------------------------------------------------------------------
# ConvBlock forward: ReflectionPad2d(1) -> Conv2d(3x3, bias=True) -> ELU
# ----------------------------------------------------------------------------
def conv_block_forward(x_nchw, w_hwio, bias):
    """Matches ConvBlock.forward (Conv3x3 with reflection pad + ELU)."""
    x = jnp.transpose(x_nchw, (0, 2, 3, 1)).astype(jnp.float32)     # NHWC
    N, H, W, Cin = x.shape
    KH, KW, _, Cout = w_hwio.shape

    # TODO(synk): reflection pad + patch extraction stay as JAX glue; the
    # reflected border indexing has no rectangular-BlockSpec equivalent.
    xp = jnp.pad(x, ((0, 0), (1, 1), (1, 1), (0, 0)), mode='reflect')

    # im2col: taps ordered (kh, kw, cin) — matches the weight reshape below.
    cols = [xp[:, ih:ih + H, iw:iw + W, :]
            for ih in range(KH) for iw in range(KW)]
    patches = jnp.concatenate(cols, axis=-1).reshape(N * H * W, KH * KW * Cin)
    w_mat = w_hwio.reshape(KH * KW * Cin, Cout)

    out = matmul_bias_elu(patches, w_mat, bias)
    out = out.reshape(N, H, W, Cout)
    return jnp.transpose(out, (0, 3, 1, 2))                         # NCHW


# ----------------------------------------------------------------------------
# Parameter init (PyTorch Conv2d defaults: kaiming_uniform a=sqrt(5))
# ----------------------------------------------------------------------------
def init_convblock_params(key, cin, cout, kh=3, kw=3):
    wkey, bkey = jax.random.split(key)
    fan_in = cin * kh * kw
    bound = 1.0 / math.sqrt(fan_in)
    w = jax.random.uniform(wkey, (kh, kw, cin, cout), jnp.float32,
                           -bound, bound)
    b = jax.random.uniform(bkey, (cout,), jnp.float32, -bound, bound)
    return w, b


if __name__ == "__main__":
    key = jax.random.PRNGKey(0)
    pkey, xkey = jax.random.split(key)

    in_ch, out_ch = 4, 32
    w, b = init_convblock_params(pkey, in_ch, out_ch)
    x = jax.random.normal(xkey, (2, in_ch, 16, 16), jnp.float32)     # NCHW

    fwd = jax.jit(conv_block_forward)
    y = jax.block_until_ready(fwd(x, w, b))

    assert y.shape == (2, out_ch, 16, 16), y.shape
    assert bool(jnp.all(jnp.isfinite(y)))
    assert bool(jnp.all(y >= -1.0 - 1e-5))          # ELU is bounded below by -1

    # Pure-JAX reference (f32 conv) — bf16 MXU operands => relaxed tolerance.
    ref = jax.lax.conv_general_dilated(
        jnp.pad(x, ((0, 0), (0, 0), (1, 1), (1, 1)), mode='reflect'),
        jnp.transpose(w, (3, 2, 0, 1)),             # OIHW
        window_strides=(1, 1), padding='VALID',
        dimension_numbers=('NCHW', 'OIHW', 'NCHW')) + b.reshape(1, -1, 1, 1)
    ref = jnp.where(ref > 0, ref, jnp.exp(jnp.minimum(ref, 0.0)) - 1.0)
    max_err = float(jnp.max(jnp.abs(y - ref)))
    assert max_err < 5e-2, max_err

    print("KERNEL_OK")
</pallas_src>

<mosaic_0001>
module attributes {stable_mosaic.version = 11 : i64} {
  func.func @_mm_bias_elu_kernel(%arg0: i32, %arg1: i32, %arg2: memref<256x128xbf16, #tpu.memory_space<vmem>>, %arg3: memref<128x128xbf16, #tpu.memory_space<vmem>>, %arg4: memref<1x128xf32, #tpu.memory_space<vmem>>, %arg5: memref<256x128xf32, #tpu.memory_space<vmem>>) attributes {dimension_semantics = [#tpu.dimension_semantics<parallel>, #tpu.dimension_semantics<parallel>], iteration_bounds = array<i64: 2, 1>, scalar_prefetch = 0 : i64, scratch_operands = 0 : i64, tpu.core_type = #tpu.core_type<tc>, window_params = [{transform_indices = @transform_0, window_bounds = array<i64: 256, 128>}, {transform_indices = @transform_1, window_bounds = array<i64: 128, 128>}, {transform_indices = @transform_2, window_bounds = array<i64: 1, 128>}, {transform_indices = @transform_3, window_bounds = array<i64: 256, 128>}]} {
    %c0 = arith.constant 0 : index
    %c0_0 = arith.constant 0 : index
    %0 = vector.load %arg2[%c0, %c0_0] : memref<256x128xbf16, #tpu.memory_space<vmem>>, vector<256x128xbf16>
    %c0_1 = arith.constant 0 : index
    %c0_2 = arith.constant 0 : index
    %1 = vector.load %arg3[%c0_1, %c0_2] : memref<128x128xbf16, #tpu.memory_space<vmem>>, vector<128x128xbf16>
    %cst = arith.constant dense<0.000000e+00> : vector<256x128xf32>
    %2 = tpu.matmul %0, %1, %cst {dimension_numbers = #tpu.dot_dimension_numbers<[1], [0], [0], [1], [0, 0, 1, 1], [], []>} : vector<256x128xbf16>, vector<128x128xbf16>, vector<256x128xf32> -> vector<256x128xf32>
    %c0_3 = arith.constant 0 : index
    %c0_4 = arith.constant 0 : index
    %3 = vector.load %arg4[%c0_3, %c0_4] : memref<1x128xf32, #tpu.memory_space<vmem>>, vector<1x128xf32>
    %4 = vector.broadcast %3 : vector<1x128xf32> to vector<256x128xf32>
    %5 = arith.addf %2, %4 : vector<256x128xf32>
    %cst_5 = arith.constant 0.000000e+00 : f32
    %6 = vector.broadcast %cst_5 : f32 to vector<256x128xf32>
    %7 = arith.cmpf ogt, %5, %6 : vector<256x128xf32>
    %cst_6 = arith.constant 0.000000e+00 : f32
    %8 = vector.broadcast %cst_6 : f32 to vector<256x128xf32>
    %9 = arith.minimumf %5, %8 : vector<256x128xf32>
    %10 = math.exp %9 : vector<256x128xf32>
    %cst_7 = arith.constant 1.000000e+00 : f32
    %11 = vector.broadcast %cst_7 : f32 to vector<256x128xf32>
    %12 = arith.subf %10, %11 : vector<256x128xf32>
    %13 = arith.select %7, %5, %12 : vector<256x128xi1>, vector<256x128xf32>
    %c0_8 = arith.constant 0 : index
    %c0_9 = arith.constant 0 : index
    %14 = vector.load %arg5[%c0_8, %c0_9] : memref<256x128xf32, #tpu.memory_space<vmem>>, vector<256x128xf32>
    tpu.vector_store %arg5[%c0_8, %c0_9], %13 {strides = array<i32>} : memref<256x128xf32, #tpu.memory_space<vmem>>, vector<256x128xf32>,
    return
  }
  func.func @transform_0(%arg0: i32, %arg1: i32) -> (i32, i32) {
    %c0_i32 = arith.constant 0 : i32
    %c0_i32_0 = arith.constant 0 : i32
    return %arg0, %c0_i32 : i32, i32
  }
  func.func @transform_1(%arg0: i32, %arg1: i32) -> (i32, i32) {
    %c0_i32 = arith.constant 0 : i32
    %c0_i32_0 = arith.constant 0 : i32
    return %c0_i32, %arg1 : i32, i32
  }
  func.func @transform_2(%arg0: i32, %arg1: i32) -> (i32, i32) {
    %c0_i32 = arith.constant 0 : i32
    %c0_i32_0 = arith.constant 0 : i32
    return %c0_i32, %arg1 : i32, i32
  }
  func.func @transform_3(%arg0: i32, %arg1: i32) -> (i32, i32) {
    %c0_i32 = arith.constant 0 : i32
    return %arg0, %arg1 : i32, i32
  }
}

</mosaic_0001>

<bundles_post_ra>
// kernel: conv_block_forward.1
= control target key start
LH: loop header
LB: loop body
LE: loop exit
PB: predicated region body
PF: predicated region fallthrough
CT: control target
= control target key end

     0   :  { %8 = vsyncpa [#allocation3], 0  ;;  %s1786_s0 = inlined_call_operand.vmem [shape: bf16[512,128], index: 0, kind: input, shape index: {}]   ;;  %s1787_s1 = inlined_call_operand.vmem [shape: bf16[128,128], index: 1, kind: input, shape index: {}]   ;;  %s1788_s2 = inlined_call_operand.vmem [shape: f32[1,128], index: 2, kind: input, shape index: {}]   ;;  %s1789_s3 = inlined_call_operand.hbm [shape: f32[512,128], index: 3, kind: output, shape index: {}]  }
   0x1   :  { %10 = vsyncpa [#allocation3 + $0x1], 0  ;;  %s1325_s12 = smov 0   ;;  %s1327_s13 = smov 0  }
   0x2   :  { %s1329_s14 = smov 0   ;;  %s1331_s15 = smov 0  }
   0x3   :  { %s1333_s16 = smov 0   ;;  %s1335_s17 = smov 0  }
   0x4 LB: > { %s916_s18 = sadd.s32 4294967295, %s1300_s17   ;;  %s917_s19 = sadd.s32 4294967294, %s1300_s17   ;;  %s1300_s17 = sphi %s1335_s17, %s16_s17   ;;  %s1296_s16 = sphi %s1333_s16, %s1796_s16   ;;  %s1292_s15 = sphi %s1331_s15, %s1795_s15   ;;  %s1288_s14 = sphi %s1329_s14, %s1794_s14   ;;  %s1284_s13 = sphi %s1327_s13, %s1793_s13   ;;  %s1280_s12 = sphi %s1325_s12, %s1792_s12  }
   0x5   : > { %s28_s20 = sadd.s32 1, %s1296_s16  ;;  %s115_s21 = sadd.s32 1, %s1288_s14 }
   0x6   : > { %p30_p0 = scmp.ge.s32.totalorder %s28_s20, 2  ;;  %p125_p1 = scmp.ne.s32.totalorder %s1288_s14, %s1284_s13 }
   0x7   : > { %p126_p2 = scmp.eq.s32.totalorder %s916_s18, 1  ;;  %p131_p3 = scmp.ne.s32.totalorder %s1284_s13, %s1280_s12 }
   0x8   : > { %s1798_s20 = smov (%p30_p0, %s28_s20), 0  ;;  %p132_p5 = scmp.eq.s32.totalorder %s917_s19, 1 }
   0x9   : > { %p1365_p4 = por %p126_p2, %p125_p1  ;;  %s110_s23 = ssub.s32 %s1296_s16, %s1798_s20 }
   0xa   : > { %p922_p6 = scmp.ge.s32.totalorder %s1300_s17, 1  ;;  %p113_p7 = scmp.eq.s32.totalorder %s110_s23, 0 }
   0xb   : > { %p1372_p8 = por %p132_p5, %p131_p3  ;;  %p172_p9 = scmp.lt.s32.totalorder %s1300_s17, 3 }
   0xc   : > { %s1378_s25 = scalar_select %p113_p7, %s1288_s14, %s115_s21  }
   0xd   : > { %p173_p10 = pnand %p922_p6, %p172_p9 }
   0xe   : > { %v1134_v0 = vld [vmem:[%s1787_s1] sm:$0xff] (!%p173_p10)   ;;  %s924_s28 = sshll.u32 (!%p173_p10), %s1292_s15, 5  ;;  %v1135_v1 = vld [vmem:[%s1787_s1 + $0x8] sm:$0xff] (!%p173_p10)   ;;  %v1136_v2 = vld [vmem:[%s1787_s1 + $0x10] sm:$0xff] (!%p173_p10)   ;;  %s200_s5 = sand.u32 (!%p173_p10), 1, %s1284_s13  }
   0xf   : > { %176 = sbr.rel (%p173_p10) target bundleno = 340 (0x154), region = 32  ;;  %p204_p11 = scmp.lt.s32.totalorder (!%p173_p10), %s924_s28, 63  ;;  %1013 = vmatprep.subr.bf16.mxu0 (!%p173_p10), %v1134_v0  ;;  %1061 = vmatprep.subr.bf16.mxu1 (!%p173_p10), %v1134_v0  ;;  %v1137_v3 = vld [vmem:[%s1787_s1 + $0x18] sm:$0xff] (!%p173_p10)   ;;  %v1138_v6 = vld [vmem:[%s1787_s1 + $0x20] sm:$0xff] (!%p173_p10)   ;;  %v1139_v7 = vld [vmem:[%s1787_s1 + $0x28] sm:$0xff] (!%p173_p10)  }
  0x10   : > { %1014 = vmatpush3.bf16.msra.mxu0 (!%p173_p10), %v1134_v0  ;;  %1069 = vmatpush3.bf16.msra.mxu1 (!%p173_p10), %v1134_v0  ;;  %v1140_v8 = vld [vmem:[%s1787_s1 + $0x30] sm:$0xff] (!%p173_p10)   ;;  %v1141_v9 = vld [vmem:[%s1787_s1 + $0x38] sm:$0xff] (!%p173_p10)   ;;  %v1429_v24 = vld [vmem:[%s1788_s2] ss:$0 sm:$0xff] (!%p173_p10)  ;;  %s988_s8 = sshll.u32 (!%p173_p10), %s1292_s15, 12  ;;  %s1740_s18 = scalar_lea.sflag (!%p173_p10), [#allocation3], %s200_s5 }
  0x11   : > { %1015 = vmatprep.subr.bf16.mxu0 (!%p173_p10), %v1135_v1  ;;  %1062 = vmatprep.subr.bf16.mxu1 (!%p173_p10), %v1135_v1  ;;  %s1730_s15 = scalar_lea.hbm (!%p173_p10), %s1789_s3, %s988_s8  ;;  %s1302_s21 = smov (!%p173_p10), [#allocation2]  }
  0x12   : > { %s1226_s23 = sshll.u32 (!%p173_p10), %s1302_s21, 4  ;;  %s1227_s23 = int_to_ptr.vmem [resolvable:$false] %s1226_s23 }
  0x13   : > { %s1228_s26 = scalar_lea.vmem (!%p173_p10), %s1227_s23, 8192 }
  0x14   : > { %1016 = vmatpush3.bf16.msra.mxu0 (!%p173_p10), %v1135_v1  ;;  %1070 = vmatpush3.bf16.msra.mxu1 (!%p173_p10), %v1135_v1 }
  0x15   : > { %1017 = vmatprep.subr.bf16.mxu0 (!%p173_p10), %v1136_v2  ;;  %1063 = vmatprep.subr.bf16.mxu1 (!%p173_p10), %v1136_v2 }
  0x16   : > { %s1800_s28 = smov (!%p204_p11, %s924_s28), 63 }
  0x17   : > { %s925_s6 = sshll.u32 %s1800_s28, 2 }
  0x18   : > { %s1393_s9 = scalar_lea.vmem %s1786_s0, %s925_s6  ;;  %1018 = vmatpush3.bf16.msra.mxu0 %v1136_v2  ;;  %1071 = vmatpush3.bf16.msra.mxu1 %v1136_v2  ;;  %s1485_s6 = sshll.u32 %s200_s5, 8 }
  0x19   : > { %v1142_v4 = vld [vmem:[%s1393_s9] sm:$0xff]   ;;  %1019 = vmatprep.subr.bf16.mxu0 %v1137_v3  ;;  %1064 = vmatprep.subr.bf16.mxu1 %v1137_v3  ;;  %v1144_v10 = vld [vmem:[%s1393_s9 + $0x8] sm:$0xff]   ;;  %v1146_v12 = vld [vmem:[%s1393_s9 + $0x10] sm:$0xff]   ;;  %s1523_s7 = scalar_lea.vmem [#allocation2], %s1485_s6 }
  0x1a   : > { %v1143_v5 = vld [vmem:[%s1393_s9 + $0x40] sm:$0xff]   ;;  %1029 = vmatprep.mubr.bf16.mxu0 %v1142_v4  ;;  %v1145_v11 = vld [vmem:[%s1393_s9 + $0x48] sm:$0xff]   ;;  %v1147_v13 = vld [vmem:[%s1393_s9 + $0x50] sm:$0xff]  }
  0x1b   : > { %1045 = vmatprep.mubr.bf16.mxu1 %v1143_v5  ;;  %v1148_v14 = vld [vmem:[%s1393_s9 + $0x18] sm:$0xff]   ;;  %v1150_v16 = vld [vmem:[%s1393_s9 + $0x20] sm:$0xff]   ;;  %v1152_v18 = vld [vmem:[%s1393_s9 + $0x28] sm:$0xff]  }
  0x1c   : > { %1020 = vmatpush3.bf16.msra.mxu0 %v1137_v3  ;;  %1072 = vmatpush3.bf16.msra.mxu1 %v1137_v3  ;;  %v1149_v15 = vld [vmem:[%s1393_s9 + $0x58] sm:$0xff]   ;;  %v1151_v17 = vld [vmem:[%s1393_s9 + $0x60] sm:$0xff]   ;;  %v1153_v19 = vld [vmem:[%s1393_s9 + $0x68] sm:$0xff]  }
  0x1d   : > { %1021 = vmatprep.subr.bf16.mxu0 %v1138_v6  ;;  %1065 = vmatprep.subr.bf16.mxu1 %v1138_v6  ;;  %v1154_v20 = vld [vmem:[%s1393_s9 + $0x30] sm:$0xff]   ;;  %v1156_v22 = vld [vmem:[%s1393_s9 + $0x38] sm:$0xff]  }
  0x1e   : > { %v1155_v21 = vld [vmem:[%s1393_s9 + $0x70] sm:$0xff]   ;;  %v1157_v23 = vld [vmem:[%s1393_s9 + $0x78] sm:$0xff]   ;;  %s817_s9 = sshll.u32 %s1523_s7, 4  ;;  %s1732_s9 = int_to_ptr.vmem [resolvable:$true] %s817_s9 }
  0x1f   : > { %s1222_s19 = scalar_lea.vmem %s1732_s9, 4096  ;;  %p1229_p1 = scmp.lt.s32.totalorder %s1732_s9, %s1227_s23 }
  0x20   : > { %1022 = vmatpush3.bf16.msra.mxu0 %v1138_v6  ;;  %1073 = vmatpush3.bf16.msra.mxu1 %v1138_v6  ;;  %p1223_p12 = scmp.ne.s32.totalorder %s1732_s9, %s1222_s19  ;;  %p1230_p2 = scmp.lt.s32.totalorder %s1228_s26, %s1222_s19 }
  0x21   : > { %1023 = vmatprep.subr.bf16.mxu0 %v1139_v7  ;;  %1066 = vmatprep.subr.bf16.mxu1 %v1139_v7 }
  0x22   : > { %p1224_p13 = pnand %p1223_p12, %p1365_p4  ;;  %p1231_p3 = por %p1230_p2, %p1229_p1 }
  0x24   : > { %1024 = vmatpush3.bf16.msra.mxu0 %v1139_v7  ;;  %1074 = vmatpush3.bf16.msra.mxu1 %v1139_v7  ;;  %p1225_p0 = pneg %p1224_p13 }
  0x25   : > { %1025 = vmatprep.subr.bf16.mxu0 %v1140_v8  ;;  %1067 = vmatprep.subr.bf16.mxu1 %v1140_v8 }
  0x26   : > { %p1232_p5 = pnand %p1231_p3, %p1225_p0 }
  0x28   : > { %1026 = vmatpush3.bf16.msra.mxu0 %v1140_v8  ;;  %1075 = vmatpush3.bf16.msra.mxu1 %v1140_v8 }
  0x29   : > { %1027 = vmatprep.subr.bf16.mxu0 %v1141_v9  ;;  %1068 = vmatprep.subr.bf16.mxu1 %v1141_v9 }
  0x2c   : > { %1028 = vmatpush3.bf16.msra.mxu0 %v1141_v9  ;;  %1076 = vmatpush3.bf16.msra.mxu1 %v1141_v9 }
  0x2f   : > { %1030 = vmatmul.mubr.bf16.vlgmr.msra.gmra.mrb[0].mxu0 %v1144_v10  ;;  %1046 = vmatmul.mubr.bf16.vlgmr.msra.gmra.mrb[0].mxu1 %v1145_v11 }
  0x30   : > { %1033 = vmatprep.mubr.bf16.mxu0 %v1146_v12  ;;  %1049 = vmatprep.mubr.bf16.mxu1 %v1147_v13 }
  0x37   : > { %1034 = vmatmul.mubr.bf16.gmra.mrb[4].mxu0 %v1148_v14  ;;  %1050 = vmatmul.mubr.bf16.gmra.mrb[4].mxu1 %v1149_v15 }
  0x38   : > { %1037 = vmatprep.mubr.bf16.mxu0 %v1150_v16  ;;  %1053 = vmatprep.mubr.bf16.mxu1 %v1151_v17 }
  0x3f   : > { %1038 = vmatmul.mubr.bf16.gmra.mrb[8].mxu0 %v1152_v18  ;;  %1054 = vmatmul.mubr.bf16.gmra.mrb[8].mxu1 %v1153_v19 }
  0x40   : > { %1041 = vmatprep.mubr.bf16.mxu0 %v1154_v20  ;;  %1057 = vmatprep.mubr.bf16.mxu1 %v1155_v21 }
  0x47   : > { %1042 = vmatmul.mubr.bf16.gmra.mrb[12].mxu0 %v1156_v22  ;;  %1058 = vmatmul.mubr.bf16.gmra.mrb[12].mxu1 %v1157_v23 }
 0x102   : > { %v1031_v25 = vpop.f32.mrb[0].mxu0  ;;  %v1047_v26 = vpop.f32.mrb[0].mxu1 }
 0x103   : > { %v1432_v27 = vadd.f32 %v1031_v25, %v1429_v24  ;;  %v1435_v28 = vadd.f32 %v1047_v26, %v1429_v24  ;;  %v451_v29 = vpop.f32.mrb[1].mxu0  ;;  %v515_v30 = vpop.f32.mrb[1].mxu1 }
 0x104   : > { %v1438_v31 = vadd.f32 %v1429_v24, %v451_v29  ;;  %v1441_v32 = vadd.f32 %v1429_v24, %v515_v30  ;;  %v1032_v33 = vpop.f32.mrb[2].mxu0  ;;  %v1048_v34 = vpop.f32.mrb[2].mxu1 }
 0x105   : > { %v612_v35 = vmin.f32 %v1432_v27, 0.0  ;;  %v628_v36 = vmin.f32 %v1435_v28, 0.0  ;;  %v454_v37 = vpop.f32.mrb[3].mxu0  ;;  %v518_v38 = vpop.f32.mrb[3].mxu1  ;;  %v1448_v43 = vadd.f32 %v1032_v33, %v1429_v24  ;;  %v1451_v44 = vadd.f32 %v1048_v34, %v1429_v24 }
 0x106   : > { %v610_v39 = vmin.f32 %v1438_v31, 0.0  ;;  %v626_v40 = vmin.f32 %v1441_v32, 0.0  ;;  %v1454_v47 = vadd.f32 %v1429_v24, %v454_v37  ;;  %v1457_v48 = vadd.f32 %v1429_v24, %v518_v38 }
 0x107   : > { %v646_v41 = vmul.f32 1.442695, %v612_v35  ;;  %v678_v42 = vmul.f32 1.442695, %v628_v36  ;;  %v613_v49 = vmin.f32 %v1448_v43, 0.0  ;;  %v629_v50 = vmin.f32 %v1451_v44, 0.0 }
 0x108   : > { %v642_v45 = vmul.f32 1.442695, %v610_v39  ;;  %v674_v46 = vmul.f32 1.442695, %v626_v40  ;;  %v611_v51 = vmin.f32 %v1454_v47, 0.0  ;;  %v627_v55 = vmin.f32 %v1457_v48, 0.0 }
 0x109   : > { %1158 = vpow2.f32 %v646_v41  ;;  %v648_v54 = vmul.f32 1.442695, %v613_v49  ;;  %v680_v58 = vmul.f32 1.442695, %v629_v50  ;;  %vm580_vm0 = vcmp.gt.f32.partialorder %v1432_v27, 0.0 }
 0x10a   : > { %1160 = vpow2.f32 %v678_v42  ;;  %v1035_v52 = vpop.f32.mrb[4].mxu0  ;;  %v1051_v53 = vpop.f32.mrb[4].mxu1  ;;  %v644_v59 = vmul.f32 1.442695, %v611_v51  ;;  %v676_v63 = vmul.f32 1.442695, %v627_v55 }
 0x10b   : > { %1162 = vpow2.f32 %v642_v45  ;;  %v467_v56 = vpop.f32.mrb[5].mxu0  ;;  %v531_v57 = vpop.f32.mrb[5].mxu1  ;;  %v1464_v60 = vadd.f32 %v1035_v52, %v1429_v24  ;;  %v1467_v0 = vadd.f32 %v1051_v53, %v1429_v24  ;;  %vm596_vm1 = vcmp.gt.f32.partialorder %v1435_v28, 0.0 }
 0x10c   : > { %1164 = vpow2.f32 %v674_v46  ;;  %v1036_v61 = vpop.f32.mrb[6].mxu0  ;;  %v1052_v62 = vpop.f32.mrb[6].mxu1  ;;  %v1470_v1 = vadd.f32 %v1429_v24, %v467_v56  ;;  %v1476_v5 = vadd.f32 %v1429_v24, %v531_v57  ;;  %vm578_vm2 = vcmp.gt.f32.partialorder %v1438_v31, 0.0 }
 0x10d   : > { %1166 = vpow2.f32 %v648_v54  ;;  %v470_v2 = vpop.f32.mrb[7].mxu0  ;;  %v534_v3 = vpop.f32.mrb[7].mxu1  ;;  %v616_v4 = vmin.f32 %v1464_v60, 0.0  ;;  %v632_v6 = vmin.f32 %v1467_v0, 0.0  ;;  %vm594_vm3 = vcmp.gt.f32.partialorder %v1441_v32, 0.0 }
 0x10e   : > { %1168 = vpow2.f32 %v680_v58  ;;  %v614_v8 = vmin.f32 %v1470_v1, 0.0  ;;  %vm581_vm4 = vcmp.gt.f32.partialorder %v1448_v43, 0.0  ;;  %v630_v10 = vmin.f32 %v1476_v5, 0.0 }
 0x10f   : > { %1170 = vpow2.f32 %v644_v59  ;;  %v654_v7 = vmul.f32 1.442695, %v616_v4  ;;  %v686_v9 = vmul.f32 1.442695, %v632_v6  ;;  %v1490_v11 = vadd.f32 %v1036_v61, %v1429_v24 }
 0x110   : > { %1172 = vpow2.f32 %v676_v63  ;;  %v1493_v12 = vadd.f32 %v1052_v62, %v1429_v24  ;;  %vm597_vm5 = vcmp.gt.f32.partialorder %v1451_v44, 0.0  ;;  %v650_v13 = vmul.f32 1.442695, %v614_v8 }
 0x111   : > { %1174 = vpow2.f32 %v654_v7  ;;  %v1497_v14 = vadd.f32 %v1429_v24, %v470_v2  ;;  %vm579_vm6 = vcmp.gt.f32.partialorder %v1454_v47, 0.0  ;;  %v682_v18 = vmul.f32 1.442695, %v630_v10 }
 0x112   : > { %v1039_v15 = vpop.f32.mrb[8].mxu0  ;;  %v1055_v16 = vpop.f32.mrb[8].mxu1  ;;  %1176 = vpow2.f32 %v686_v9  ;;  %v617_v19 = vmin.f32 %v1490_v11, 0.0  ;;  %vm595_vm7 = vcmp.gt.f32.partialorder %v1457_v48, 0.0  ;;  %v633_v25 = vmin.f32 %v1493_v12, 0.0 }
 0x113   : > { %v1159_v17 = vpop.eup %1158  ;;  %v1501_v20 = vpop.f32.mrb[9].mxu0  ;;  %1178 = vpow2.f32 %v650_v13  ;;  %v1512_v35 = vadd.f32 %v1429_v24, %v534_v3  ;;  %v615_v42 = vmin.f32 %v1497_v14, 0.0  ;;  %vm584_vm8 = vcmp.gt.f32.partialorder %v1464_v60, 0.0 }
 0x114   : > { %v1503_v21 = vpop.f32.mrb[9].mxu1  ;;  %v1161_v22 = vpop.eup %1160  ;;  %v953_v23 = vadd.f32 -1.0, %v1159_v17  ;;  %1180 = vpow2.f32 %v682_v18  ;;  %v656_v34 = vmul.f32 1.442695, %v617_v19  ;;  %v688_v41 = vmul.f32 1.442695, %v633_v25 }
 0x115   : > { %v1507_v26 = vpop.f32.mrb[10].mxu0  ;;  %v1509_v29 = vpop.f32.mrb[10].mxu1  ;;  %v969_v33 = vadd.f32 -1.0, %v1161_v22  ;;  %v652_v52 = vmul.f32 1.442695, %v615_v42  ;;  %v631_v55 = vmin.f32 %v1512_v35, 0.0  ;;  %v1540_v56 = vadd.f32 %v1039_v15, %v1429_v24 }
 0x116   : > { %v1163_v30 = vpop.eup %1162  ;;  %v1514_v36 = vpop.f32.mrb[11].mxu0  ;;  %v740_v39 = vsel %vm580_vm0, %v1432_v27, %v953_v23  ;;  %1182 = vpow2.f32 %v656_v34  ;;  %v1547_v59 = vadd.f32 %v1055_v16, %v1429_v24  ;;  %vm600_vm9 = vcmp.gt.f32.partialorder %v1467_v0, 0.0 }
 0x117   : > { %v1516_v37 = vpop.f32.mrb[11].mxu1  ;;  %v1165_v38 = vpop.eup %1164  ;;  %v951_v40 = vadd.f32 -1.0, %v1163_v30  ;;  %772 = vst [vmem:[%s1523_s7 + $0x10] sm:$0xff] %v740_v39  ;;  %v756_v46 = vsel %vm596_vm1, %v1435_v28, %v969_v33  ;;  %1184 = vpow2.f32 %v688_v41  ;;  %v684_v2 = vmul.f32 1.442695, %v631_v55 }
 0x118   : > { %v1167_v45 = vpop.eup %1166  ;;  %v967_v49 = vadd.f32 -1.0, %v1165_v38  ;;  %788 = vst [vmem:[%s1523_s7 + $0x90] sm:$0xff] %v756_v46  ;;  %1186 = vpow2.f32 %v652_v52  ;;  %vm582_vm10 = vcmp.gt.f32.partialorder %v1470_v1, 0.0  ;;  %v620_v7 = vmin.f32 %v1540_v56, 0.0 }
 0x119   : > { %v1169_v27 = vpop.eup %1168  ;;  %v738_v50 = vsel %vm578_vm2, %v1438_v31, %v951_v40  ;;  %v954_v51 = vadd.f32 -1.0, %v1167_v45  ;;  %1188 = vpow2.f32 %v684_v2  ;;  %vm598_vm11 = vcmp.gt.f32.partialorder %v1476_v5, 0.0 }
 0x11a   : > { %v1171_v53 = vpop.eup %1170  ;;  %770 = vst [vmem:[%s1523_s7] sm:$0xff] %v738_v50  ;;  %v754_v28 = vsel %vm594_vm3, %v1441_v32, %v967_v49  ;;  %v970_v54 = vadd.f32 -1.0, %v1169_v27  ;;  %v1549_v61 = vpop.f32.mrb[12].mxu0  ;;  %v662_v22 = vmul.f32 1.442695, %v620_v7  ;;  %vm585_vm12 = vcmp.gt.f32.partialorder %v1490_v11, 0.0 }
 0x11b   : > { %v1173_v57 = vpop.eup %1172  ;;  %786 = vst [vmem:[%s1523_s7 + $0x80] sm:$0xff] %v754_v28  ;;  %v741_v31 = vsel %vm581_vm4, %v1448_v43, %v954_v51  ;;  %v952_v58 = vadd.f32 -1.0, %v1171_v53  ;;  %v1551_v32 = vpop.f32.mrb[12].mxu1  ;;  %v1609_v45 = vadd.f32 %v1507_v26, %v1429_v24  ;;  %v1613_v46 = vadd.f32 %v1509_v29, %v1429_v24 }
 0x11c   : > { %773 = vst [vmem:[%s1523_s7 + $0x18] sm:$0xff] %v741_v31  ;;  %v757_v62 = vsel %vm597_vm5, %v1451_v44, %v970_v54  ;;  %v968_v63 = vadd.f32 -1.0, %v1173_v57  ;;  %v1558_v43 = vpop.f32.mrb[13].mxu0  ;;  %v1560_v3 = vpop.f32.mrb[13].mxu1  ;;  %v636_v44 = vmin.f32 %v1547_v59, 0.0  ;;  %1190 = vpow2.f32 %v662_v22 }
 0x11d   : > { %v1175_v4 = vpop.eup %1174  ;;  %789 = vst [vmem:[%s1523_s7 + $0x98] sm:$0xff] %v757_v62  ;;  %v739_v6 = vsel %vm579_vm6, %v1454_v47, %v952_v58  ;;  %v1569_v8 = vpop.f32.mrb[14].mxu0  ;;  %v1579_v47 = vadd.f32 %v1429_v24, %v1501_v20  ;;  %v1618_v27 = vadd.f32 %v1429_v24, %v1514_v36  ;;  %vm601_vm13 = vcmp.gt.f32.partialorder %v1493_v12, 0.0 }
 0x11e   : > { %v1571_v9 = vpop.f32.mrb[14].mxu1  ;;  %v1177_v10 = vpop.eup %1176  ;;  %771 = vst [vmem:[%s1523_s7 + $0x8] sm:$0xff] %v739_v6  ;;  %v755_v13 = vsel %vm595_vm7, %v1457_v48, %v968_v63  ;;  %v957_v15 = vadd.f32 -1.0, %v1175_v4  ;;  %v694_v23 = vmul.f32 1.442695, %v636_v44  ;;  %v1588_v48 = vadd.f32 %v1429_v24, %v1503_v21 }
 0x11f   : > { %v1581_v16 = vpop.f32.mrb[15].mxu0  ;;  %v1583_v17 = vpop.f32.mrb[15].mxu1  ;;  %787 = vst [vmem:[%s1523_s7 + $0x88] sm:$0xff] %v755_v13  ;;  %v973_v19 = vadd.f32 -1.0, %v1177_v10  ;;  %v618_v33 = vmin.f32 %v1579_v47, 0.0  ;;  %v621_v26 = vmin.f32 %v1609_v45, 0.0  ;;  %v1642_v57 = vadd.f32 %v1551_v32, %v1429_v24 }
 0x120   : > { %v1179_v18 = vpop.eup %1178  ;;  %v744_v20 = vsel %vm584_vm8, %v1464_v60, %v957_v15  ;;  %1192 = vpow2.f32 %v694_v23  ;;  %v634_v40 = vmin.f32 %v1588_v48, 0.0  ;;  %v637_v52 = vmin.f32 %v1613_v46, 0.0 }
 0x121   : > { %v1181_v25 = vpop.eup %1180  ;;  %v955_v30 = vadd.f32 -1.0, %v1179_v18  ;;  %776 = vst [vmem:[%s1523_s7 + $0x30] sm:$0xff] %v744_v20  ;;  %v760_v34 = vsel %vm600_vm9, %v1467_v0, %v973_v19  ;;  %v658_v39 = vmul.f32 1.442695, %v618_v33  ;;  %vm583_vm14 = vcmp.gt.f32.partialorder %v1497_v14, 0.0 }
 0x122   : > { %v971_v38 = vadd.f32 -1.0, %v1181_v25  ;;  %v1183_v21 = vpop.eup %1182  ;;  %792 = vst [vmem:[%s1523_s7 + $0xb0] sm:$0xff] %v760_v34  ;;  %v690_v49 = vmul.f32 1.442695, %v634_v40  ;;  %v664_v36 = vmul.f32 1.442695, %v621_v26  ;;  %v1654_v7 = vadd.f32 %v1429_v24, %v1558_v43 }
 0x123   : > { %v742_v60 = vsel %vm582_vm10, %v1470_v1, %v955_v30  ;;  %v1185_v41 = vpop.eup %1184  ;;  %v958_v42 = vadd.f32 -1.0, %v1183_v21  ;;  %1194 = vpow2.f32 %v658_v39  ;;  %v619_v53 = vmin.f32 %v1618_v27, 0.0 }
 0x124   : > { %774 = vst [vmem:[%s1523_s7 + $0x20] sm:$0xff] %v742_v60  ;;  %v758_v0 = vsel %vm598_vm11, %v1476_v5, %v971_v38  ;;  %v974_v1 = vadd.f32 -1.0, %v1185_v41  ;;  %v1187_v50 = vpop.eup %1186  ;;  %1196 = vpow2.f32 %v690_v49  ;;  %v696_v55 = vmul.f32 1.442695, %v637_v52 }
 0x125   : > { %790 = vst [vmem:[%s1523_s7 + $0xa0] sm:$0xff] %v758_v0  ;;  %v745_v5 = vsel %vm585_vm12, %v1490_v11, %v958_v42  ;;  %v956_v51 = vadd.f32 -1.0, %v1187_v50  ;;  %v1633_v11 = vadd.f32 %v1429_v24, %v1516_v37  ;;  %v1189_v28 = vpop.eup %1188  ;;  %1198 = vpow2.f32 %v664_v36 }
 0x126   : > { %777 = vst [vmem:[%s1523_s7 + $0x38] sm:$0xff] %v745_v5  ;;  %v761_v29 = vsel %vm601_vm13, %v1493_v12, %v974_v1  ;;  %v1638_v12 = vadd.f32 %v1549_v61, %v1429_v24  ;;  %v972_v31 = vadd.f32 -1.0, %v1189_v28  ;;  %v660_v58 = vmul.f32 1.442695, %v619_v53  ;;  %v1191_v62 = vpop.eup %1190 }
 0x127   : > { %793 = vst [vmem:[%s1523_s7 + $0xb8] sm:$0xff] %v761_v29  ;;  %v743_v54 = vsel %vm583_vm14, %v1497_v14, %v956_v51  ;;  %vm599_vm15 = vcmp.gt.f32.partialorder %v1512_v35, 0.0  ;;  %1200 = vpow2.f32 %v696_v55  ;;  %v635_v37 = vmin.f32 %v1633_v11, 0.0 }
 0x128   : > { %775 = vst [vmem:[%s1523_s7 + $0x28] sm:$0xff] %v743_v54  ;;  %v624_v14 = vmin.f32 %v1638_v12, 0.0  ;;  %v759_v61 = vsel %vm599_vm15, %v1512_v35, %v972_v31  ;;  %vm588_vm0 = vcmp.gt.f32.partialorder %v1540_v56, 0.0  ;;  %1202 = vpow2.f32 %v660_v58 }
 0x129   : > { %v640_v32 = vmin.f32 %v1642_v57, 0.0  ;;  %791 = vst [vmem:[%s1523_s7 + $0xa8] sm:$0xff] %v759_v61  ;;  %v961_v2 = vadd.f32 -1.0, %v1191_v62  ;;  %v692_v4 = vmul.f32 1.442695, %v635_v37  ;;  %v1658_v35 = vadd.f32 %v1429_v24, %v1560_v3 }
 0x12a   : > { %v1193_v63 = vpop.eup %1192  ;;  %v670_v6 = vmul.f32 1.442695, %v624_v14  ;;  %v1662_v13 = vadd.f32 %v1569_v8, %v1429_v24  ;;  %vm604_vm1 = vcmp.gt.f32.partialorder %v1547_v59, 0.0  ;;  %v622_v43 = vmin.f32 %v1654_v7, 0.0 }
 0x12b   : > { %v977_v44 = vadd.f32 -1.0, %v1193_v63  ;;  %v702_v10 = vmul.f32 1.442695, %v640_v32  ;;  %v748_v18 = vsel %vm588_vm0, %v1540_v56, %v961_v2  ;;  %1204 = vpow2.f32 %v692_v4 }
 0x12c   : > { %780 = vst [vmem:[%s1523_s7 + $0x50] sm:$0xff] %v748_v18  ;;  %vm586_vm2 = vcmp.gt.f32.partialorder %v1579_v47, 0.0  ;;  %1206 = vpow2.f32 %v670_v6  ;;  %vm602_vm3 = vcmp.gt.f32.partialorder %v1588_v48, 0.0  ;;  %v666_v8 = vmul.f32 1.442695, %v622_v43 }
 0x12d   : > { %v1195_v15 = vpop.eup %1194  ;;  %v764_v19 = vsel %vm604_vm1, %v1547_v59, %v977_v44  ;;  %1208 = vpow2.f32 %v702_v10  ;;  %v638_v56 = vmin.f32 %v1658_v35, 0.0  ;;  %v625_v20 = vmin.f32 %v1662_v13, 0.0 }
 0x12e   : > { %v959_v3 = vadd.f32 -1.0, %v1195_v15  ;;  %v1197_v22 = vpop.eup %1196  ;;  %796 = vst [vmem:[%s1523_s7 + $0xd0] sm:$0xff] %v764_v19  ;;  %v1677_v59 = vadd.f32 %v1571_v9, %v1429_v24  ;;  %1210 = vpow2.f32 %v666_v8  ;;  %v1682_v33 = vadd.f32 %v1429_v24, %v1581_v16 }
 0x12f   : > { %v975_v25 = vadd.f32 -1.0, %v1197_v22  ;;  %v698_v30 = vmul.f32 1.442695, %v638_v56  ;;  %v1686_v34 = vadd.f32 %v1429_v24, %v1583_v17  ;;  %v1199_v38 = vpop.eup %1198  ;;  %v672_v21 = vmul.f32 1.442695, %v625_v20 }
 0x130   : > { %v746_v23 = vsel %vm586_vm2, %v1579_v47, %v959_v3  ;;  %v641_v60 = vmin.f32 %v1677_v59, 0.0  ;;  %vm589_vm4 = vcmp.gt.f32.partialorder %v1609_v45, 0.0  ;;  %v962_v39 = vadd.f32 -1.0, %v1199_v38 }
 0x131   : > { %778 = vst [vmem:[%s1523_s7 + $0x40] sm:$0xff] %v746_v23  ;;  %v762_v47 = vsel %vm602_vm3, %v1588_v48, %v975_v25  ;;  %v1201_v9 = vpop.eup %1200  ;;  %1212 = vpow2.f32 %v698_v30  ;;  %v623_v16 = vmin.f32 %v1682_v33, 0.0  ;;  %vm605_vm5 = vcmp.gt.f32.partialorder %v1613_v46, 0.0 }
 0x132   : > { %794 = vst [vmem:[%s1523_s7 + $0xc0] sm:$0xff] %v762_v47  ;;  %v1203_v40 = vpop.eup %1202  ;;  %v978_v24 = vadd.f32 -1.0, %v1201_v9  ;;  %1214 = vpow2.f32 %v672_v21  ;;  %v704_v17 = vmul.f32 1.442695, %v641_v60  ;;  %v749_v48 = vsel %vm589_vm4, %v1609_v45, %v962_v39 }
 0x133   : > { %v960_v41 = vadd.f32 -1.0, %v1203_v40  ;;  %v668_v0 = vmul.f32 1.442695, %v623_v16  ;;  %v639_v42 = vmin.f32 %v1686_v34, 0.0  ;;  %781 = vst [vmem:[%s1523_s7 + $0x58] sm:$0xff] %v749_v48  ;;  %vm587_vm6 = vcmp.gt.f32.partialorder %v1618_v27, 0.0 }
 0x134   : > { %v765_v1 = vsel %vm605_vm5, %v1613_v46, %v978_v24  ;;  %1216 = vpow2.f32 %v704_v17  ;;  %vm603_vm7 = vcmp.gt.f32.partialorder %v1633_v11, 0.0  ;;  %vm592_vm8 = vcmp.gt.f32.partialorder %v1638_v12, 0.0 }
 0x135   : > { %v1205_v49 = vpop.eup %1204  ;;  %797 = vst [vmem:[%s1523_s7 + $0xd8] sm:$0xff] %v765_v1  ;;  %v747_v50 = vsel %vm587_vm6, %v1618_v27, %v960_v41  ;;  %1218 = vpow2.f32 %v668_v0  ;;  %v700_v5 = vmul.f32 1.442695, %v639_v42  ;;  %vm608_vm9 = vcmp.gt.f32.partialorder %v1642_v57, 0.0 }
 0x136   : > { %v1207_v26 = vpop.eup %1206  ;;  %779 = vst [vmem:[%s1523_s7 + $0x48] sm:$0xff] %v747_v50  ;;  %v976_v45 = vadd.f32 -1.0, %v1205_v49  ;;  %vm590_vm10 = vcmp.gt.f32.partialorder %v1654_v7, 0.0  ;;  %vm606_vm11 = vcmp.gt.f32.partialorder %v1658_v35, 0.0  ;;  %vm593_vm12 = vcmp.gt.f32.partialorder %v1662_v13, 0.0 }
 0x137   : > { %v1209_v29 = vpop.eup %1208  ;;  %v965_v51 = vadd.f32 -1.0, %v1207_v26  ;;  %1220 = vpow2.f32 %v700_v5  ;;  %vm609_vm13 = vcmp.gt.f32.partialorder %v1677_v59, 0.0  ;;  %vm591_vm14 = vcmp.gt.f32.partialorder %v1682_v33, 0.0 }
 0x138   : > { %v763_v46 = vsel %vm603_vm7, %v1633_v11, %v976_v45  ;;  %v981_v52 = vadd.f32 -1.0, %v1209_v29  ;;  %v1211_v36 = vpop.eup %1210  ;;  %vm607_vm15 = vcmp.gt.f32.partialorder %v1686_v34, 0.0 }
 0x139   : > { %795 = vst [vmem:[%s1523_s7 + $0xc8] sm:$0xff] %v763_v46  ;;  %v752_v27 = vsel %vm592_vm8, %v1638_v12, %v965_v51  ;;  %v963_v28 = vadd.f32 -1.0, %v1211_v36 }
 0x13a   : > { %784 = vst [vmem:[%s1523_s7 + $0x70] sm:$0xff] %v752_v27  ;;  %v768_v53 = vsel %vm608_vm9, %v1642_v57, %v981_v52 }
 0x13b   : > { %v1213_v54 = vpop.eup %1212  ;;  %800 = vst [vmem:[%s1523_s7 + $0xf0] sm:$0xff] %v768_v53  ;;  %v750_v55 = vsel %vm590_vm10, %v1654_v7, %v963_v28 }
 0x13c   : > { %v1215_v11 = vpop.eup %1214  ;;  %v979_v31 = vadd.f32 -1.0, %v1213_v54  ;;  %782 = vst [vmem:[%s1523_s7 + $0x60] sm:$0xff] %v750_v55 }
 0x13d   : > { %v966_v12 = vadd.f32 -1.0, %v1215_v11 }
 0x13e   : > { %v1217_v58 = vpop.eup %1216  ;;  %v766_v57 = vsel %vm606_vm11, %v1658_v35, %v979_v31 }
 0x13f   : > { %v1219_v37 = vpop.eup %1218  ;;  %798 = vst [vmem:[%s1523_s7 + $0xe0] sm:$0xff] %v766_v57  ;;  %v753_v14 = vsel %vm593_vm12, %v1662_v13, %v966_v12  ;;  %v982_v62 = vadd.f32 -1.0, %v1217_v58 }
 0x140   : > { %785 = vst [vmem:[%s1523_s7 + $0x78] sm:$0xff] %v753_v14  ;;  %v964_v61 = vadd.f32 -1.0, %v1219_v37 }
 0x141   : > { %v1221_v32 = vpop.eup %1220  ;;  %v769_v63 = vsel %vm609_vm13, %v1677_v59, %v982_v62 }
 0x142   : > { %801 = vst [vmem:[%s1523_s7 + $0xf8] sm:$0xff] %v769_v63  ;;  %v751_v2 = vsel %vm591_vm14, %v1682_v33, %v964_v61  ;;  %v980_v4 = vadd.f32 -1.0, %v1221_v32 }
 0x143   : > { %783 = vst [vmem:[%s1523_s7 + $0x68] sm:$0xff] %v751_v2 }
 0x144   : > { %v767_v6 = vsel %vm607_vm15, %v1686_v34, %v980_v4 }
 0x145   : > { %799 = vst [vmem:[%s1523_s7 + $0xe8] sm:$0xff] %v767_v6 }
 0x146   : > { %1235 = shalt.err (!%p1232_p5)
}
 0x147   : > { %s1236_s27 = scalar_lea.hbm %s1730_s15, 4096  ;;  %s1240_s30 = scalar_lea.hbm %s1789_s3, 8192 }
 0x148   : > { %p1237_p6 = scmp.ne.s32.totalorder %s1730_s15, %s1236_s27  ;;  %p1241_p10 = scmp.lt.u32.totalorder %s1730_s15, %s1789_s3 }
 0x149   : > { %p1242_p11 = scmp.lt.u32.totalorder %s1240_s30, %s1236_s27  ;;  %p1244_p13 = scmp.lt.u32.totalorder %s1236_s27, %s1730_s15 }
 0x14a   : > { %p1238_p7 = pnand %p1237_p6, %p1365_p4 }
 0x14b   : > { %p1243_p12 = por %p1242_p11, %p1241_p10 }
 0x14c   : > { %p1239_p9 = pneg %p1238_p7 }
 0x14d   : > { %p1245_p0 = por %p1244_p13, %p1243_p12 }
 0x14f   : > { %p1246_p1 = pnand %p1245_p0, %p1239_p9 }
 0x151   : > { %1249 = shalt.err (!%p1246_p1)
}
 0x152   : > { %s1303_s6 = smov 128   ;;  %s1304_s7 = smov 8  }
 0x153   : > { %1077 = dma.vmem_to_hbm [thread:$0]  (%p1365_p4), %s1732_s9, 4096, %s1730_s15, %s1740_s18, %s1303_s6, %s1303_s6, %s1304_s7  }
 0x154 PF: > { %p1083_p2 = scmp.ge.s32.totalorder %s1300_s17, 2  ;;  %s832_s8 = sand.u32 1, %s1280_s12  }
 0x155   : > { %s833_s10 = scalar_lea.sflag [#allocation3], %s832_s8 }
 0x156   : > { %p1080_p3 = pnand %p1083_p2, %p1372_p8 }
 0x158   : > { %1275 = dma.done.wait (!%p1080_p3), %s833_s10, 4096  }
 0x159   : > { %1277 = vsyncadd (!%p1080_p3), %s833_s10, 4294963200  ;;  %s16_s17 = sadd.s32 1, %s1300_s17   ;;  %s1792_s12 = smov %s1284_s13 }
 0x15a   : > { %p13_p5 = scmp.ge.s32.totalorder %s16_s17, 4   ;;  %s1793_s13 = smov %s1288_s14 }
 0x15b   : > { %s1794_s14 = smov %s1378_s25  ;;  %s1795_s15 = smov %s1296_s16 }
 0x15c   : > { %s1796_s16 = smov %s1798_s20  ;;  %15 = sbr.rel (!%p13_p5) target bundleno = 4 (0x4), region = 73 }
 0x163   :  { %838 = vsyncpa [#allocation3], 1 }
 0x164   :  { %840 = vsyncpa [#allocation3 + $0x1], 1 }

</bundles_post_ra>
